<compile_context>
chip_gen: v7x
topology: tpu7x:2x2x1
jax: 0.10.0
libtpu: 0.0.40
codegen_flags: <defaults>
</compile_context>

<pallas_src>
import jax
import jax.numpy as jnp
from jax.experimental import pallas as pl
from jax.experimental.pallas import tpu as pltpu


def _round_up(x: int, m: int) -> int:
    return ((x + m - 1) // m) * m


def _make_kernel(tanh_bf16: bool, n_steps: int):
    def kernel(dt_ref, y_ref, w1_ref, b1_ref, w2_ref, b2_ref, out_ref):
        # --- hoisted scalar prep (one SMEM read per grid step) ---
        dt = dt_ref[0]
        half_dt = 0.5 * dt
        dt_over_6 = dt * (1.0 / 6.0)

        w1 = w1_ref[...]            # (Dk, Hk) bf16 (MXU operand, VMEM-resident)
        w2 = w2_ref[...]            # (Hk, Dk) bf16 (MXU operand, VMEM-resident)
        b1 = b1_ref[...]            # (1, Hk) f32 — sublane-broadcast in the add
        b2 = b2_ref[...]            # (1, Dk) f32 — never materialized at tile size

        def ode_func(y):
            """ODEFunc.forward: dy/dt = model(y). bf16 MXU operands, f32 accum.
            tanh in bf16 on v6e/v7x (bf16 EUP); f32 on v5e."""
            pre = (
                jnp.dot(y.astype(jnp.bfloat16), w1,
                        preferred_element_type=jnp.float32)
                + b1
            )
            if tanh_bf16:
                h = jnp.tanh(pre.astype(jnp.bfloat16))
            else:
                h = jnp.tanh(pre).astype(jnp.bfloat16)
            return (
                jnp.dot(h, w2, preferred_element_type=jnp.float32) + b2
            )

        def rk4_step(y):
            # Incremental accumulation: only ~3 (TB, Dk) f32 temporaries live.
            k = ode_func(y)                       # k1
            acc = k
            k = ode_func(y + half_dt * k)         # k2
            acc = acc + 2.0 * k
            k = ode_func(y + half_dt * k)         # k3
            acc = acc + 2.0 * k
            k = ode_func(y + dt * k)              # k4
            acc = acc + k
            return y + dt_over_6 * acc

        y = y_ref[...]                            # (TB, Dk) f32
        if n_steps == 1:
            y = rk4_step(y)
        else:
            # Trajectory fusion: y never round-trips HBM between steps.
            y = jax.lax.fori_loop(0, n_steps, lambda _, yy: rk4_step(yy), y)
        out_ref[...] = y.astype(out_ref.dtype)

    return kernel


def neural_ode_forward(inputs, params, *, block_rows: int = 1024,
                       n_steps: int = 1, tanh_bf16=None):
    """Mirror of NeuralODE.forward: inputs = (y0, dt); integrator = rk4_step."""
    y0, dt = inputs
    w1, b1, w2, b2 = params
    B, D = y0.shape
    H = w1.shape[1]

    if tanh_bf16 is None:
        try:
            kind = jax.devices()[0].device_kind.lower()
            tanh_bf16 = not any(v in kind for v in ("v2", "v3", "v4", "v5"))
        except Exception:  # pragma: no cover - safe default
            tanh_bf16 = False

    # --- row packing: P logical rows per 128-lane row (streamed arrays dense) ---
    if D < 128 and 128 % D == 0:
        P = 128 // D
    else:
        # Fallback: no feature padding, full-array feature blocks (masked
        # stores are acceptable and still beat 4x streamed-byte inflation).
        P = 1
    Dk = P * D          # packed feature width (=128 when packing)
    Hk = P * H          # packed hidden width (=256 in the example)

    # --- packed-batch tile selection: pad <= one tile, grid >= 2 when possible ---
    Bm = -(-B // P)                              # packed rows (ceil)
    if Bm <= 8:
        TB = Bm                                   # single full block (legal)
    else:
        TB = min(block_rows, _round_up(-(-Bm // 2), 8))   # >= 2 grid steps
    Bm_pad = _round_up(Bm, TB)
    B_pad = Bm_pad * P

    y_in = y0.astype(jnp.float32)
    if B_pad != B:
        # Only when B is not already tileable: minimal batch-row pad.
        y_in = jnp.zeros((B_pad, D), jnp.float32).at[:B].set(y_in)
    y_packed = y_in.reshape(Bm_pad, Dk)          # contiguous reshape, no HBM pad pass

    # Block-diagonal weight replication (exact: multiplies by 1.0 / 0.0 only).
    eye_p = jnp.eye(P, dtype=jnp.float32)
    w1_k = jnp.kron(eye_p, w1.astype(jnp.float32)).astype(jnp.bfloat16)   # (Dk, Hk)
    w2_k = jnp.kron(eye_p, w2.astype(jnp.float32)).astype(jnp.bfloat16)   # (Hk, Dk)
    b1_k = jnp.tile(b1.astype(jnp.float32).reshape(1, H), (1, P))         # (1, Hk)
    b2_k = jnp.tile(b2.astype(jnp.float32).reshape(1, D), (1, P))         # (1, Dk)

    # VMEM budget: resident weights + double-buffered streamed in/out blocks,
    # with headroom for in-kernel temporaries. Capped v7x-safe (< 64 MiB).
    weight_bytes = 2 * (Dk * Hk + Hk * Dk) + 4 * (Hk + Dk)
    stream_bytes = 2 * 2 * TB * Dk * 4           # in+out, 2-deep, f32
    vmem_limit = int(min(48 * 1024 * 1024,
                         max(16 * 1024 * 1024, 4 * (weight_bytes + stream_bytes))))

    grid = (Bm_pad // TB,)

    out_packed = pl.pallas_call(
        _make_kernel(tanh_bf16, n_steps),
        out_shape=jax.ShapeDtypeStruct((Bm_pad, Dk), y0.dtype),
        grid=grid,
        in_specs=[
            # dt: scalar, lives in SMEM, untiled.
            pl.BlockSpec(memory_space=pltpu.MemorySpace.SMEM),
            # y: streamed over packed batch rows -> pipelined HBM<->VMEM DMA.
            pl.BlockSpec((TB, Dk), lambda i: (i, 0)),
            # Weights / biases: same block every step -> stay VMEM-resident.
            pl.BlockSpec((Dk, Hk), lambda i: (0, 0)),
            pl.BlockSpec((1, Hk), lambda i: (0, 0)),
            pl.BlockSpec((Hk, Dk), lambda i: (0, 0)),
            pl.BlockSpec((1, Dk), lambda i: (0, 0)),
        ],
        out_specs=pl.BlockSpec((TB, Dk), lambda i: (i, 0)),
        compiler_params=pltpu.CompilerParams(
            dimension_semantics=("parallel",),   # megacore sharding on v7x
            vmem_limit_bytes=vmem_limit,
        ),
    )(dt.astype(jnp.float32), y_packed, w1_k, b1_k, w2_k, b2_k)

    out = out_packed.reshape(B_pad, D)
    if B_pad != B:
        out = out[:B]
    return out


def _reference_forward(inputs, params, *, tanh_bf16: bool = False, n_steps: int = 1):
    """Pure-JAX reference of rk4_step(ode_func, y0, dt) with the same numerics
    as the kernel (bf16 dot operands, f32 accumulation, matching tanh path)."""
    y0, dt = inputs
    w1, b1, w2, b2 = params
    dt = dt[0]

    w1b = w1.astype(jnp.bfloat16)
    w2b = w2.astype(jnp.bfloat16)
    b1f = b1.astype(jnp.float32).reshape(1, -1)
    b2f = b2.astype(jnp.float32).reshape(1, -1)

    def f(y):
        pre = jnp.dot(y.astype(jnp.bfloat16), w1b,
                      preferred_element_type=jnp.float32) + b1f
        if tanh_bf16:
            h = jnp.tanh(pre.astype(jnp.bfloat16))
        else:
            h = jnp.tanh(pre).astype(jnp.bfloat16)
        return jnp.dot(h, w2b, preferred_element_type=jnp.float32) + b2f

    y = y0.astype(jnp.float32)
    for _ in range(n_steps):
        k1 = f(y)
        k2 = f(y + 0.5 * dt * k1)
        k3 = f(y + 0.5 * dt * k2)
        k4 = f(y + dt * k3)
        y = y + (dt / 6.0) * (k1 + 2.0 * k2 + 2.0 * k3 + k4)
    return y


if __name__ == "__main__":
    B, D, H = 8, 32, 64  # batch, state dim, hidden dim of the vector field MLP

    key = jax.random.PRNGKey(0)
    k_y0, k_w1, k_b1, k_w2, k_b2 = jax.random.split(key, 5)

    # Deterministic parameter init (synthetic, no checkpoint load).
    w1 = jax.random.normal(k_w1, (D, H), dtype=jnp.float32) * 0.1
    b1 = jax.random.normal(k_b1, (1, H), dtype=jnp.float32) * 0.01
    w2 = jax.random.normal(k_w2, (H, D), dtype=jnp.float32) * 0.1
    b2 = jax.random.normal(k_b2, (1, D), dtype=jnp.float32) * 0.01
    params = (w1, b1, w2, b2)

    # inputs = (y0, dt), matching NeuralODE.forward(inputs)
    y0 = jax.random.normal(k_y0, (B, D), dtype=jnp.float32)
    dt = jnp.array([0.1], dtype=jnp.float32)
    inputs = (y0, dt)

    # Decide tanh precision once so kernel and reference use the same path.
    try:
        _kind = jax.devices()[0].device_kind.lower()
        use_bf16_tanh = not any(v in _kind for v in ("v2", "v3", "v4", "v5"))
    except Exception:
        use_bf16_tanh = False

    out = neural_ode_forward(inputs, params, tanh_bf16=use_bf16_tanh)
    out = jax.block_until_ready(out)

    ref = _reference_forward(inputs, params, tanh_bf16=use_bf16_tanh)
    assert out.shape == (B, D)
    # bf16 transcendental path warrants a bf16-level tolerance; f32 path is tight.
    tol = 5e-3 if use_bf16_tanh else 1e-4
    assert jnp.allclose(out, ref, atol=tol, rtol=tol), "mismatch vs reference"

    print("KERNEL_OK")
</pallas_src>

<mosaic_0001>
module attributes {stable_mosaic.version = 11 : i64} {
  func.func @kernel(%arg0: i32, %arg1: memref<1xf32, #tpu.memory_space<smem>>, %arg2: memref<2x128xf32, #tpu.memory_space<vmem>>, %arg3: memref<128x256xbf16, #tpu.memory_space<vmem>>, %arg4: memref<1x256xf32, #tpu.memory_space<vmem>>, %arg5: memref<256x128xbf16, #tpu.memory_space<vmem>>, %arg6: memref<1x128xf32, #tpu.memory_space<vmem>>, %arg7: memref<2x128xf32, #tpu.memory_space<vmem>>) attributes {dimension_semantics = [#tpu.dimension_semantics<parallel>], iteration_bounds = array<i64: 1>, scalar_prefetch = 0 : i64, scratch_operands = 0 : i64, tpu.core_type = #tpu.core_type<tc>, window_params = [{transform_indices = @transform_0, window_bounds = array<i64: 1>}, {transform_indices = @transform_1, window_bounds = array<i64: 2, 128>}, {pipeline_mode = #tpu.pipeline_mode<synchronous>, transform_indices = @transform_2, window_bounds = array<i64: 128, 256>}, {pipeline_mode = #tpu.pipeline_mode<synchronous>, transform_indices = @transform_3, window_bounds = array<i64: 1, 256>}, {pipeline_mode = #tpu.pipeline_mode<synchronous>, transform_indices = @transform_4, window_bounds = array<i64: 256, 128>}, {pipeline_mode = #tpu.pipeline_mode<synchronous>, transform_indices = @transform_5, window_bounds = array<i64: 1, 128>}, {transform_indices = @transform_6, window_bounds = array<i64: 2, 128>}]} {
    %c0 = arith.constant 0 : index
    %0 = memref.load %arg1[%c0] : memref<1xf32, #tpu.memory_space<smem>>
    %cst = arith.constant 5.000000e-01 : f32
    %1 = arith.mulf %cst, %0 : f32
    %cst_0 = arith.constant 0.166666672 : f32
    %2 = arith.mulf %0, %cst_0 : f32
    %c0_1 = arith.constant 0 : index
    %c0_2 = arith.constant 0 : index
    %3 = vector.load %arg3[%c0_1, %c0_2] : memref<128x256xbf16, #tpu.memory_space<vmem>>, vector<128x256xbf16>
    %c0_3 = arith.constant 0 : index
    %c0_4 = arith.constant 0 : index
    %4 = vector.load %arg5[%c0_3, %c0_4] : memref<256x128xbf16, #tpu.memory_space<vmem>>, vector<256x128xbf16>
    %c0_5 = arith.constant 0 : index
    %c0_6 = arith.constant 0 : index
    %5 = vector.load %arg4[%c0_5, %c0_6] : memref<1x256xf32, #tpu.memory_space<vmem>>, vector<1x256xf32>
    %c0_7 = arith.constant 0 : index
    %c0_8 = arith.constant 0 : index
    %6 = vector.load %arg6[%c0_7, %c0_8] : memref<1x128xf32, #tpu.memory_space<vmem>>, vector<1x128xf32>
    %c0_9 = arith.constant 0 : index
    %c0_10 = arith.constant 0 : index
    %7 = vector.load %arg2[%c0_9, %c0_10] : memref<2x128xf32, #tpu.memory_space<vmem>>, vector<2x128xf32>
    %8 = arith.truncf %7 : vector<2x128xf32> to vector<2x128xbf16>
    %cst_11 = arith.constant dense<0.000000e+00> : vector<2x256xf32>
    %9 = tpu.matmul %8, %3, %cst_11 {dimension_numbers = #tpu.dot_dimension_numbers<[1], [0], [0], [1], [0, 0, 1, 1], [], []>} : vector<2x128xbf16>, vector<128x256xbf16>, vector<2x256xf32> -> vector<2x256xf32>
    %10 = vector.broadcast %5 : vector<1x256xf32> to vector<2x256xf32>
    %11 = arith.addf %9, %10 : vector<2x256xf32>
    %12 = arith.truncf %11 : vector<2x256xf32> to vector<2x256xbf16>
    %13 = math.tanh %12 : vector<2x256xbf16>
    %cst_12 = arith.constant dense<0.000000e+00> : vector<2x128xf32>
    %14 = tpu.matmul %13, %4, %cst_12 {dimension_numbers = #tpu.dot_dimension_numbers<[1], [0], [0], [1], [0, 0, 1, 1], [], []>} : vector<2x256xbf16>, vector<256x128xbf16>, vector<2x128xf32> -> vector<2x128xf32>
    %15 = vector.broadcast %6 : vector<1x128xf32> to vector<2x128xf32>
    %16 = arith.addf %14, %15 : vector<2x128xf32>
    %17 = vector.broadcast %1 : f32 to vector<2x128xf32>
    %18 = arith.mulf %17, %16 : vector<2x128xf32>
    %19 = arith.addf %7, %18 : vector<2x128xf32>
    %20 = arith.truncf %19 : vector<2x128xf32> to vector<2x128xbf16>
    %cst_13 = arith.constant dense<0.000000e+00> : vector<2x256xf32>
    %21 = tpu.matmul %20, %3, %cst_13 {dimension_numbers = #tpu.dot_dimension_numbers<[1], [0], [0], [1], [0, 0, 1, 1], [], []>} : vector<2x128xbf16>, vector<128x256xbf16>, vector<2x256xf32> -> vector<2x256xf32>
    %22 = vector.broadcast %5 : vector<1x256xf32> to vector<2x256xf32>
    %23 = arith.addf %21, %22 : vector<2x256xf32>
    %24 = arith.truncf %23 : vector<2x256xf32> to vector<2x256xbf16>
    %25 = math.tanh %24 : vector<2x256xbf16>
    %cst_14 = arith.constant dense<0.000000e+00> : vector<2x128xf32>
    %26 = tpu.matmul %25, %4, %cst_14 {dimension_numbers = #tpu.dot_dimension_numbers<[1], [0], [0], [1], [0, 0, 1, 1], [], []>} : vector<2x256xbf16>, vector<256x128xbf16>, vector<2x128xf32> -> vector<2x128xf32>
    %27 = vector.broadcast %6 : vector<1x128xf32> to vector<2x128xf32>
    %28 = arith.addf %26, %27 : vector<2x128xf32>
    %cst_15 = arith.constant 2.000000e+00 : f32
    %29 = vector.broadcast %cst_15 : f32 to vector<2x128xf32>
    %30 = arith.mulf %29, %28 : vector<2x128xf32>
    %31 = arith.addf %16, %30 : vector<2x128xf32>
    %32 = vector.broadcast %1 : f32 to vector<2x128xf32>
    %33 = arith.mulf %32, %28 : vector<2x128xf32>
    %34 = arith.addf %7, %33 : vector<2x128xf32>
    %35 = arith.truncf %34 : vector<2x128xf32> to vector<2x128xbf16>
    %cst_16 = arith.constant dense<0.000000e+00> : vector<2x256xf32>
    %36 = tpu.matmul %35, %3, %cst_16 {dimension_numbers = #tpu.dot_dimension_numbers<[1], [0], [0], [1], [0, 0, 1, 1], [], []>} : vector<2x128xbf16>, vector<128x256xbf16>, vector<2x256xf32> -> vector<2x256xf32>
    %37 = vector.broadcast %5 : vector<1x256xf32> to vector<2x256xf32>
    %38 = arith.addf %36, %37 : vector<2x256xf32>
    %39 = arith.truncf %38 : vector<2x256xf32> to vector<2x256xbf16>
    %40 = math.tanh %39 : vector<2x256xbf16>
    %cst_17 = arith.constant dense<0.000000e+00> : vector<2x128xf32>
    %41 = tpu.matmul %40, %4, %cst_17 {dimension_numbers = #tpu.dot_dimension_numbers<[1], [0], [0], [1], [0, 0, 1, 1], [], []>} : vector<2x256xbf16>, vector<256x128xbf16>, vector<2x128xf32> -> vector<2x128xf32>
    %42 = vector.broadcast %6 : vector<1x128xf32> to vector<2x128xf32>
    %43 = arith.addf %41, %42 : vector<2x128xf32>
    %cst_18 = arith.constant 2.000000e+00 : f32
    %44 = vector.broadcast %cst_18 : f32 to vector<2x128xf32>
    %45 = arith.mulf %44, %43 : vector<2x128xf32>
    %46 = arith.addf %31, %45 : vector<2x128xf32>
    %47 = vector.broadcast %0 : f32 to vector<2x128xf32>
    %48 = arith.mulf %47, %43 : vector<2x128xf32>
    %49 = arith.addf %7, %48 : vector<2x128xf32>
    %50 = arith.truncf %49 : vector<2x128xf32> to vector<2x128xbf16>
    %cst_19 = arith.constant dense<0.000000e+00> : vector<2x256xf32>
    %51 = tpu.matmul %50, %3, %cst_19 {dimension_numbers = #tpu.dot_dimension_numbers<[1], [0], [0], [1], [0, 0, 1, 1], [], []>} : vector<2x128xbf16>, vector<128x256xbf16>, vector<2x256xf32> -> vector<2x256xf32>
    %52 = vector.broadcast %5 : vector<1x256xf32> to vector<2x256xf32>
    %53 = arith.addf %51, %52 : vector<2x256xf32>
    %54 = arith.truncf %53 : vector<2x256xf32> to vector<2x256xbf16>
    %55 = math.tanh %54 : vector<2x256xbf16>
    %cst_20 = arith.constant dense<0.000000e+00> : vector<2x128xf32>
    %56 = tpu.matmul %55, %4, %cst_20 {dimension_numbers = #tpu.dot_dimension_numbers<[1], [0], [0], [1], [0, 0, 1, 1], [], []>} : vector<2x256xbf16>, vector<256x128xbf16>, vector<2x128xf32> -> vector<2x128xf32>
    %57 = vector.broadcast %6 : vector<1x128xf32> to vector<2x128xf32>
    %58 = arith.addf %56, %57 : vector<2x128xf32>
    %59 = arith.addf %46, %58 : vector<2x128xf32>
    %60 = vector.broadcast %2 : f32 to vector<2x128xf32>
    %61 = arith.mulf %60, %59 : vector<2x128xf32>
    %62 = arith.addf %7, %61 : vector<2x128xf32>
    %c0_21 = arith.constant 0 : index
    %c0_22 = arith.constant 0 : index
    %63 = vector.load %arg7[%c0_21, %c0_22] : memref<2x128xf32, #tpu.memory_space<vmem>>, vector<2x128xf32>
    tpu.vector_store %arg7[%c0_21, %c0_22], %62 {strides = array<i32>} : memref<2x128xf32, #tpu.memory_space<vmem>>, vector<2x128xf32>,
    return
  }
  func.func @transform_0(%arg0: i32) -> i32 {
    %c0_i32 = arith.constant 0 : i32
    %c0_i32_0 = arith.constant 0 : i32
    return %c0_i32 : i32
  }
  func.func @transform_1(%arg0: i32) -> (i32, i32) {
    %c0_i32 = arith.constant 0 : i32
    %c0_i32_0 = arith.constant 0 : i32
    return %arg0, %c0_i32 : i32, i32
  }
  func.func @transform_2(%arg0: i32) -> (i32, i32) {
    %c0_i32 = arith.constant 0 : i32
    %c0_i32_0 = arith.constant 0 : i32
    %c0_i32_1 = arith.constant 0 : i32
    return %c0_i32, %c0_i32_0 : i32, i32
  }
  func.func @transform_3(%arg0: i32) -> (i32, i32) {
    %c0_i32 = arith.constant 0 : i32
    %c0_i32_0 = arith.constant 0 : i32
    %c0_i32_1 = arith.constant 0 : i32
    return %c0_i32, %c0_i32_0 : i32, i32
  }
  func.func @transform_4(%arg0: i32) -> (i32, i32) {
    %c0_i32 = arith.constant 0 : i32
    %c0_i32_0 = arith.constant 0 : i32
    %c0_i32_1 = arith.constant 0 : i32
    return %c0_i32, %c0_i32_0 : i32, i32
  }
  func.func @transform_5(%arg0: i32) -> (i32, i32) {
    %c0_i32 = arith.constant 0 : i32
    %c0_i32_0 = arith.constant 0 : i32
    %c0_i32_1 = arith.constant 0 : i32
    return %c0_i32, %c0_i32_0 : i32, i32
  }
  func.func @transform_6(%arg0: i32) -> (i32, i32) {
    %c0_i32 = arith.constant 0 : i32
    %c0_i32_0 = arith.constant 0 : i32
    return %arg0, %c0_i32 : i32, i32
  }
}

</mosaic_0001>

<bundles_post_ra>
// kernel: tpu_custom_call.1
= control target key start
LH: loop header
LB: loop body
LE: loop exit
PB: predicated region body
PF: predicated region fallthrough
CT: control target
= control target key end

     0   :  { %12 = vsyncpa [#allocation4], 0  ;;  %s1258_s0 = inlined_call_operand.<no memory space> [shape: f32[1], index: 0, kind: input, shape index: {}]   ;;  %s1259_s1 = inlined_call_operand.vmem [shape: f32[2,128], index: 1, kind: input, shape index: {}]   ;;  %s1260_s2 = inlined_call_operand.hbm [shape: bf16[128,256], index: 2, kind: input, shape index: {}]   ;;  %s1261_s3 = inlined_call_operand.vmem [shape: f32[1,256], index: 3, kind: input, shape index: {}]   ;;  %s1262_s4 = inlined_call_operand.hbm [shape: bf16[256,128], index: 4, kind: input, shape index: {}]   ;;  %s1263_s5 = inlined_call_operand.vmem [shape: f32[1,128], index: 5, kind: input, shape index: {}]   ;;  %s1264_s6 = inlined_call_operand.hbm [shape: f32[2,128], index: 6, kind: output, shape index: {}]  }
   0x1   :  { %13 = vsyncpa [#allocation7], 0 }
   0x2   :  { %14 = vsyncpa [#allocation5], 0  ;;  %s935_s21 = smov [#allocation3]   ;;  %s863_s25 = scalar_lea.hbm %s1260_s2, 2048 }
   0x3   :  { %s24_s22 = sshll.u32 %s935_s21, 4  ;;  %p864_p0 = scmp.ne.s32.totalorder %s1260_s2, %s863_s25  ;;  %s25_s22 = int_to_ptr.vmem [resolvable:$true] %s24_s22 }
   0x4   :  { %p867_p1 = scmp.lt.u32.totalorder %s863_s25, %s1260_s2 }
   0x6   :  { %p869_p2 = pnand %p867_p1, %p864_p0 }
   0x8   :  { %872 = shalt.err (!%p869_p2)
}
   0x9   :  { %s873_s30 = scalar_lea.vmem %s25_s22, 2048  ;;  %p878_p4 = scmp.lt.s32.totalorder %s25_s22, %s25_s22 }
   0xa   :  { %p874_p3 = scmp.ne.s32.totalorder %s25_s22, %s873_s30  ;;  %p879_p5 = scmp.lt.s32.totalorder %s873_s30, %s873_s30 }
   0xc   :  { %p880_p6 = por %p879_p5, %p878_p4 }
   0xe   :  { %p881_p7 = pnand %p880_p6, %p874_p3 }
  0x10   :  { %884 = shalt.err (!%p881_p7)
}
  0x11   :  { %s936_s7 = smov 128   ;;  %s937_s8 = smov 8  }
  0x12   :  { %30 = dma.hbm_to_vmem [thread:$0]  %s1260_s2, 2048, %s25_s22, [#allocation4], %s936_s7, %s936_s7, %s937_s8  }
  0x13   :  { %s938_s11 = smov [#allocation6]   ;;  %s885_s15 = scalar_lea.hbm %s1262_s4, 2048 }
  0x14   :  { %s38_s12 = sshll.u32 %s938_s11, 4  ;;  %p886_p8 = scmp.ne.s32.totalorder %s1262_s4, %s885_s15  ;;  %s39_s12 = int_to_ptr.vmem [resolvable:$true] %s38_s12 }
  0x15   :  { %p889_p9 = scmp.lt.u32.totalorder %s885_s15, %s1262_s4 }
  0x17   :  { %p891_p10 = pnand %p889_p9, %p886_p8 }
  0x19   :  { %894 = shalt.err (!%p891_p10)
}
  0x1a   :  { %s895_s20 = scalar_lea.vmem %s39_s12, 2048  ;;  %p900_p12 = scmp.lt.s32.totalorder %s39_s12, %s39_s12 }
  0x1b   :  { %p896_p11 = scmp.ne.s32.totalorder %s39_s12, %s895_s20  ;;  %p901_p13 = scmp.lt.s32.totalorder %s895_s20, %s895_s20 }
  0x1d   :  { %p902_p0 = por %p901_p13, %p900_p12 }
  0x1f   :  { %p903_p1 = pnand %p902_p0, %p896_p11 }
  0x21   :  { %906 = shalt.err (!%p903_p1)
}
  0x22   :  { %s939_s2 = smov 64   ;;  %s940_s21 = smov 4  }
  0x23   :  { %44 = dma.hbm_to_vmem [thread:$0]  %s1262_s4, 2048, %s39_s12, [#allocation7], %s939_s2, %s939_s2, %s940_s21  }
  0x24   :  { %929 = dma.done.wait [#allocation4], 2048  }
  0x25   :  { %930 = vsyncadd [#allocation4], 4294965248 }
  0x26   :  { %931 = dma.done.wait [#allocation7], 2048  }
  0x27   :  { %932 = vsyncadd [#allocation7], 4294965248  ;;  %v941_v0 = vmov 0   ;;  %v1003_v1 = vld [vmem:[#allocation3 + $0x4] ss:$8 sps:$4 sm:$0xff]   ;;  %v1042_v15 = vld [vmem:[#allocation6 + $0x50] sm:$0xff]   ;;  %v110_v35 = vlaneseq }
  0x28   :  { %232 = vmatprep.mubr.bf16.mxu0 %v941_v0  ;;  %v1005_v2 = vld [vmem:[#allocation3] ss:$8 sps:$4 sm:$0xff]   ;;  %200 = vmatprep.subr.bf16.mxu0 %v1003_v1  ;;  %v1008_v3 = vld [vmem:[#allocation3 + $0x14] ss:$8 sps:$4 sm:$0xff]   ;;  %v1011_v4 = vld [vmem:[#allocation3 + $0x10] ss:$8 sps:$4 sm:$0xff]  }
  0x29   :  { %201 = vmatpush1.bf16.msra.mxu0 %v1005_v2  ;;  %v1014_v5 = vld [vmem:[#allocation3 + $0x24] ss:$8 sps:$4 sm:$0xff]   ;;  %v1017_v6 = vld [vmem:[#allocation3 + $0x20] ss:$8 sps:$4 sm:$0xff]   ;;  %v1020_v7 = vld [vmem:[#allocation3 + $0x34] ss:$8 sps:$4 sm:$0xff]  }
  0x2a   :  { %202 = vmatprep.subr.bf16.mxu0 %v1008_v3  ;;  %v1022_v8 = vld [vmem:[#allocation3 + $0x30] ss:$8 sps:$4 sm:$0xff]   ;;  %v1024_v9 = vld [vmem:[#allocation3 + $0x44] ss:$8 sps:$4 sm:$0xff]   ;;  %v1032_v12 = vld [vmem:[#allocation3 + $0x40] ss:$8 sps:$4 sm:$0xff]  }
  0x2b   :  { %v1027_v10 = vld [vmem:[#allocation6 + $0x40] sm:$0xff]   ;;  %v1035_v13 = vld [vmem:[#allocation6 + $0x48] sm:$0xff]   ;;  %v1045_v16 = vld [vmem:[#allocation3 + $0x54] ss:$8 sps:$4 sm:$0xff]   ;;  %v111_v36 = vshrl.u32 %v110_v35, 7  ;;  %s55_s27 = smul.f32 0.5, %s1258_s0 }
  0x2c   :  { %v1030_v11 = vld [vmem:[#allocation6] sm:$0xff]   ;;  %711 = vmatprep.subr.bf16.mxu1 %v1027_v10  ;;  %v1038_v14 = vld [vmem:[#allocation6 + $0x8] sm:$0xff]   ;;  %v1047_v17 = vld [vmem:[#allocation3 + $0x50] ss:$8 sps:$4 sm:$0xff]   ;;  %s56_s9 = smul.f32 0.16666667, %s1258_s0 }
  0x2d   :  { %203 = vmatpush1.bf16.msra.mxu0 %v1011_v4  ;;  %712 = vmatpush3.bf16.msra.mxu1 %v1030_v11  ;;  %v1049_v18 = vld [vmem:[#allocation6 + $0x10] sm:$0xff]   ;;  %v1051_v19 = vld [vmem:[#allocation3 + $0x64] ss:$8 sps:$4 sm:$0xff]   ;;  %v1054_v20 = vld [vmem:[#allocation6 + $0x58] sm:$0xff]   ;;  %v112_v37 = vsub.s32 0, %v111_v36  ;;  %v116_v39 = vsub.s32 1, %v111_v36  ;;  %v387_v57 = vstv %s55_s27 }
  0x2e   :  { %204 = vmatprep.subr.bf16.mxu0 %v1014_v5  ;;  %713 = vmatprep.subr.bf16.mxu1 %v1035_v13  ;;  %v1059_v21 = vld [vmem:[#allocation3 + $0x60] ss:$8 sps:$4 sm:$0xff]   ;;  %v1065_v22 = vld [vmem:[#allocation3 + $0x74] ss:$8 sps:$4 sm:$0xff]   ;;  %v1068_v23 = vld [vmem:[#allocation3 + $0x70] ss:$8 sps:$4 sm:$0xff]  }
  0x2f   :  { %v1073_v24 = vld [vmem:[%s1259_s1] sm:$0x3]  ;;  %v1097_v26 = vld [vmem:[#allocation6 + $0x18] sm:$0xff]   ;;  %v1106_v29 = vld [vmem:[#allocation6 + $0x68] sm:$0xff]   ;;  %s942_s10 = smov [#allocation8]  }
  0x30   :  { %v108_v25 = vpack.c.bf16 %v1073_v24, %v1073_v24  ;;  %v1100_v27 = vld [vmem:[#allocation6 + $0x60] sm:$0xff]   ;;  %v1108_v30 = vld [vmem:[#allocation6 + $0x28] sm:$0xff]   ;;  %v1110_v31 = vld [vmem:[#allocation6 + $0x70] sm:$0xff]   ;;  %s668_s11 = sshll.u32 %s942_s10, 4  ;;  %s669_s11 = int_to_ptr.vmem [resolvable:$true] %s668_s11 }
  0x31   :  { %205 = vmatpush1.bf16.msra.mxu0 %v1017_v6  ;;  %714 = vmatpush3.bf16.msra.mxu1 %v1038_v14  ;;  %v1102_v28 = vld [vmem:[#allocation6 + $0x20] sm:$0xff]   ;;  %v1114_v32 = vld [vmem:[#allocation6 + $0x30] sm:$0xff]   ;;  %v1117_v33 = vld [vmem:[#allocation6 + $0x78] sm:$0xff]   ;;  %s907_s12 = scalar_lea.vmem %s669_s11, 32  ;;  %p912_p3 = scmp.lt.s32.totalorder %s669_s11, %s669_s11 }
  0x32   :  { %206 = vmatprep.subr.bf16.mxu0 %v1020_v7  ;;  %715 = vmatprep.subr.bf16.mxu1 %v1042_v15  ;;  %v1120_v34 = vld [vmem:[#allocation6 + $0x38] sm:$0xff]   ;;  %v105_v38 = vld [vmem:[%s1261_s3] sm:$0x3]  ;;  %p908_p2 = scmp.ne.s32.totalorder %s669_s11, %s907_s12  ;;  %p913_p4 = scmp.lt.s32.totalorder %s907_s12, %s907_s12 }
  0x33   :  { %v1128_v40 = vrot.slane %v105_v38, %v112_v37  ;;  %v1130_v41 = vrot.slane %v105_v38, %v116_v39  ;;  %v1156_v53 = vld [vmem:[%s1263_s5] ss:$0 sm:$0xff] }
  0x34   :  { %p914_p5 = por %p913_p4, %p912_p3 }
  0x35   :  { %207 = vmatpush1.bf16.msra.mxu0 %v1022_v8  ;;  %716 = vmatpush3.bf16.msra.mxu1 %v1049_v18 }
  0x36   :  { %208 = vmatprep.subr.bf16.mxu0 %v1024_v9  ;;  %717 = vmatprep.subr.bf16.mxu1 %v1054_v20  ;;  %p915_p6 = pnand %p914_p5, %p908_p2 }
  0x39   :  { %209 = vmatpush1.bf16.msra.mxu0 %v1032_v12  ;;  %718 = vmatpush3.bf16.msra.mxu1 %v1097_v26 }
  0x3a   :  { %210 = vmatprep.subr.bf16.mxu0 %v1045_v16  ;;  %719 = vmatprep.subr.bf16.mxu1 %v1100_v27 }
  0x3d   :  { %211 = vmatpush1.bf16.msra.mxu0 %v1047_v17  ;;  %720 = vmatpush3.bf16.msra.mxu1 %v1102_v28 }
  0x3e   :  { %212 = vmatprep.subr.bf16.mxu0 %v1051_v19  ;;  %721 = vmatprep.subr.bf16.mxu1 %v1106_v29 }
  0x41   :  { %213 = vmatpush1.bf16.msra.mxu0 %v1059_v21  ;;  %722 = vmatpush3.bf16.msra.mxu1 %v1108_v30 }
  0x42   :  { %214 = vmatprep.subr.bf16.mxu0 %v1065_v22  ;;  %723 = vmatprep.subr.bf16.mxu1 %v1110_v31 }
  0x45   :  { %215 = vmatpush1.bf16.msra.mxu0 %v1068_v23  ;;  %724 = vmatpush3.bf16.msra.mxu1 %v1114_v32 }
  0x46   :  { %391 = vmatprep.subr.bf16.mxu0 %v1003_v1  ;;  %725 = vmatprep.subr.bf16.mxu1 %v1117_v33 }
  0x48   :  { %233 = vmatmul.mubr.bf16.vlgmr.msra.gmra.mrb[0].mxu0 %v108_v25 }
  0x49   :  { %392 = vmatpush1.bf16.msra.mxu0 %v1005_v2  ;;  %423 = vmatprep.mubr.bf16.mxu0 %v941_v0 }
  0x4a   :  { %393 = vmatprep.subr.bf16.mxu0 %v1008_v3  ;;  %726 = vmatpush3.bf16.msra.mxu1 %v1120_v34 }
  0x4b   :  { %733 = vmatprep.subr.bf16.mxu1 %v1027_v10 }
  0x4d   :  { %394 = vmatpush1.bf16.msra.mxu0 %v1011_v4 }
  0x4e   :  { %395 = vmatprep.subr.bf16.mxu0 %v1014_v5 }
  0x51   :  { %396 = vmatpush1.bf16.msra.mxu0 %v1017_v6 }
  0x52   :  { %397 = vmatprep.subr.bf16.mxu0 %v1020_v7 }
  0x55   :  { %398 = vmatpush1.bf16.msra.mxu0 %v1022_v8 }
  0x56   :  { %399 = vmatprep.subr.bf16.mxu0 %v1024_v9 }
  0x59   :  { %400 = vmatpush1.bf16.msra.mxu0 %v1032_v12 }
  0x5a   :  { %401 = vmatprep.subr.bf16.mxu0 %v1045_v16 }
  0x5d   :  { %402 = vmatpush1.bf16.msra.mxu0 %v1047_v17 }
  0x5e   :  { %403 = vmatprep.subr.bf16.mxu0 %v1051_v19 }
  0x61   :  { %404 = vmatpush1.bf16.msra.mxu0 %v1059_v21 }
  0x62   :  { %405 = vmatprep.subr.bf16.mxu0 %v1065_v22 }
  0x65   :  { %406 = vmatpush1.bf16.msra.mxu0 %v1068_v23 }
  0x66   :  { %481 = vmatprep.subr.bf16.mxu0 %v1003_v1 }
 0x11b   :  { %v234_v42 = vpop.f32.mrb[0].mxu0 }
 0x11c   :  { %v235_v43 = vadd.f32 %v234_v42, %v1128_v40  ;;  %v236_v44 = vpop.f32.mrb[1].mxu0 }
 0x11d   :  { %v237_v45 = vadd.f32 %v236_v44, %v1130_v41  ;;  %v238_v46 = vpop.f32.mrb[2].mxu0 }
 0x11e   :  { %v241_v47 = vpack.c.bf16 %v235_v43, %v235_v43  ;;  %v239_v48 = vpop.f32.mrb[3].mxu0 }
 0x11f   :  { %v242_v49 = vpack.c.bf16 %v237_v45, %v237_v45 }
 0x121   :  { %847 = vtanh.bf16 %v242_v49 }
 0x122   :  { %849 = vtanh.bf16 %v241_v47 }
 0x12c   :  { %v848_v50 = vpop.eup %847 }
 0x12d   :  { %v850_v51 = vpop.eup %849  ;;  %379 = vmatprep.mubr.bf16.mxu1 %v848_v50 }
 0x12e   :  { %380 = vmatmul.mubr.bf16.vlgmr.msra.gmra.mrb[0].mxu1 %v850_v51 }
 0x12f   :  { %734 = vmatpush3.bf16.msra.mxu1 %v1030_v11 }
 0x130   :  { %735 = vmatprep.subr.bf16.mxu1 %v1035_v13 }
 0x133   :  { %736 = vmatpush3.bf16.msra.mxu1 %v1038_v14 }
 0x134   :  { %737 = vmatprep.subr.bf16.mxu1 %v1042_v15 }
 0x137   :  { %738 = vmatpush3.bf16.msra.mxu1 %v1049_v18 }
 0x138   :  { %739 = vmatprep.subr.bf16.mxu1 %v1054_v20 }
 0x13b   :  { %740 = vmatpush3.bf16.msra.mxu1 %v1097_v26 }
 0x13c   :  { %741 = vmatprep.subr.bf16.mxu1 %v1100_v27 }
 0x13f   :  { %742 = vmatpush3.bf16.msra.mxu1 %v1102_v28 }
 0x140   :  { %743 = vmatprep.subr.bf16.mxu1 %v1106_v29 }
 0x143   :  { %744 = vmatpush3.bf16.msra.mxu1 %v1108_v30 }
 0x144   :  { %745 = vmatprep.subr.bf16.mxu1 %v1110_v31 }
 0x147   :  { %746 = vmatpush3.bf16.msra.mxu1 %v1114_v32 }
 0x148   :  { %747 = vmatprep.subr.bf16.mxu1 %v1117_v33 }
 0x14b   :  { %748 = vmatpush3.bf16.msra.mxu1 %v1120_v34 }
 0x14c   :  { %755 = vmatprep.subr.bf16.mxu1 %v1027_v10 }
 0x201   :  { %v727_v52 = vpop.f32.mrb[0].mxu1 }
 0x202   :  { %v728_v54 = vpop.f32.mrb[1].mxu1 }
 0x203   :  { %v729_v55 = vadd.f32 %v728_v54, %v727_v52  ;;  %v730_v56 = vpop.f32.mrb[2].mxu1 }
 0x204   :  { %v731_v58 = vpop.f32.mrb[3].mxu1 }
 0x205   :  { %v1159_v59 = vadd.f32 %v729_v55, %v1156_v53 }
 0x207   :  { %v388_v60 = vmul.f32 %v387_v57, %v1159_v59 }
 0x209   :  { %v389_v61 = vadd.f32 %v388_v60, %v1073_v24  ;;  %v658_v60 = vstv %s56_s9 }
 0x20b   :  { %v390_v62 = vpack.c.bf16 %v389_v61, %v389_v61 }
 0x20d   :  { %424 = vmatmul.mubr.bf16.vlgmr.msra.gmra.mrb[4].mxu0 %v390_v62 }
 0x20e   :  { %482 = vmatpush1.bf16.msra.mxu0 %v1005_v2  ;;  %513 = vmatprep.mubr.bf16.mxu0 %v941_v0 }
 0x20f   :  { %483 = vmatprep.subr.bf16.mxu0 %v1008_v3 }
 0x212   :  { %484 = vmatpush1.bf16.msra.mxu0 %v1011_v4 }
 0x213   :  { %485 = vmatprep.subr.bf16.mxu0 %v1014_v5 }
 0x216   :  { %486 = vmatpush1.bf16.msra.mxu0 %v1017_v6 }
 0x217   :  { %487 = vmatprep.subr.bf16.mxu0 %v1020_v7 }
 0x21a   :  { %488 = vmatpush1.bf16.msra.mxu0 %v1022_v8 }
 0x21b   :  { %489 = vmatprep.subr.bf16.mxu0 %v1024_v9 }
 0x21e   :  { %490 = vmatpush1.bf16.msra.mxu0 %v1032_v12 }
 0x21f   :  { %491 = vmatprep.subr.bf16.mxu0 %v1045_v16 }
 0x222   :  { %492 = vmatpush1.bf16.msra.mxu0 %v1047_v17 }
 0x223   :  { %493 = vmatprep.subr.bf16.mxu0 %v1051_v19 }
 0x226   :  { %494 = vmatpush1.bf16.msra.mxu0 %v1059_v21 }
 0x227   :  { %495 = vmatprep.subr.bf16.mxu0 %v1065_v22 }
 0x22a   :  { %496 = vmatpush1.bf16.msra.mxu0 %v1068_v23 }
 0x22b   :  { %572 = vmatprep.subr.bf16.mxu0 %v1003_v1 }
 0x2e0   :  { %v425_v63 = vpop.f32.mrb[4].mxu0 }
 0x2e1   :  { %v426_v25 = vadd.f32 %v425_v63, %v1128_v40  ;;  %v427_v35 = vpop.f32.mrb[5].mxu0 }
 0x2e2   :  { %v428_v36 = vadd.f32 %v427_v35, %v1130_v41  ;;  %v429_v37 = vpop.f32.mrb[6].mxu0 }
 0x2e3   :  { %v432_v38 = vpack.c.bf16 %v426_v25, %v426_v25  ;;  %v430_v39 = vpop.f32.mrb[7].mxu0 }
 0x2e4   :  { %v433_v42 = vpack.c.bf16 %v428_v36, %v428_v36 }
 0x2e6   :  { %851 = vtanh.bf16 %v433_v42 }
 0x2e7   :  { %853 = vtanh.bf16 %v432_v38 }
 0x2f1   :  { %v852_v43 = vpop.eup %851 }
 0x2f2   :  { %v854_v44 = vpop.eup %853  ;;  %468 = vmatprep.mubr.bf16.mxu1 %v852_v43 }
 0x2f3   :  { %469 = vmatmul.mubr.bf16.vlgmr.msra.gmra.mrb[4].mxu1 %v854_v44 }
 0x2f4   :  { %756 = vmatpush3.bf16.msra.mxu1 %v1030_v11 }
 0x2f5   :  { %757 = vmatprep.subr.bf16.mxu1 %v1035_v13 }
 0x2f8   :  { %758 = vmatpush3.bf16.msra.mxu1 %v1038_v14 }
 0x2f9   :  { %759 = vmatprep.subr.bf16.mxu1 %v1042_v15 }
 0x2fc   :  { %760 = vmatpush3.bf16.msra.mxu1 %v1049_v18 }
 0x2fd   :  { %761 = vmatprep.subr.bf16.mxu1 %v1054_v20 }
 0x300   :  { %762 = vmatpush3.bf16.msra.mxu1 %v1097_v26 }
 0x301   :  { %763 = vmatprep.subr.bf16.mxu1 %v1100_v27 }
 0x304   :  { %764 = vmatpush3.bf16.msra.mxu1 %v1102_v28 }
 0x305   :  { %765 = vmatprep.subr.bf16.mxu1 %v1106_v29 }
 0x308   :  { %766 = vmatpush3.bf16.msra.mxu1 %v1108_v30 }
 0x309   :  { %767 = vmatprep.subr.bf16.mxu1 %v1110_v31 }
 0x30c   :  { %768 = vmatpush3.bf16.msra.mxu1 %v1114_v32 }
 0x30d   :  { %769 = vmatprep.subr.bf16.mxu1 %v1117_v33 }
 0x310   :  { %770 = vmatpush3.bf16.msra.mxu1 %v1120_v34 }
 0x311   :  { %777 = vmatprep.subr.bf16.mxu1 %v1027_v10 }
 0x3c6   :  { %v749_v1 = vpop.f32.mrb[4].mxu1 }
 0x3c7   :  { %v750_v45 = vpop.f32.mrb[5].mxu1 }
 0x3c8   :  { %v751_v46 = vadd.f32 %v750_v45, %v749_v1  ;;  %v752_v47 = vpop.f32.mrb[6].mxu1 }
 0x3c9   :  { %v753_v48 = vpop.f32.mrb[7].mxu1 }
 0x3ca   :  { %v471_v49 = vadd.f32 %v751_v46, %v1156_v53 }
 0x3cc   :  { %v478_v50 = vmul.f32 %v471_v49, %v387_v57 }
 0x3ce   :  { %v479_v51 = vadd.f32 %v478_v50, %v1073_v24 }
 0x3d0   :  { %v480_v52 = vpack.c.bf16 %v479_v51, %v479_v51 }
 0x3d2   :  { %514 = vmatmul.mubr.bf16.vlgmr.msra.gmra.mrb[8].mxu0 %v480_v52 }
 0x3d3   :  { %573 = vmatpush1.bf16.msra.mxu0 %v1005_v2  ;;  %604 = vmatprep.mubr.bf16.mxu0 %v941_v0 }
 0x3d4   :  { %574 = vmatprep.subr.bf16.mxu0 %v1008_v3 }
 0x3d7   :  { %575 = vmatpush1.bf16.msra.mxu0 %v1011_v4 }
 0x3d8   :  { %576 = vmatprep.subr.bf16.mxu0 %v1014_v5 }
 0x3db   :  { %577 = vmatpush1.bf16.msra.mxu0 %v1017_v6 }
 0x3dc   :  { %578 = vmatprep.subr.bf16.mxu0 %v1020_v7 }
 0x3df   :  { %579 = vmatpush1.bf16.msra.mxu0 %v1022_v8 }
 0x3e0   :  { %580 = vmatprep.subr.bf16.mxu0 %v1024_v9 }
 0x3e3   :  { %581 = vmatpush1.bf16.msra.mxu0 %v1032_v12 }
 0x3e4   :  { %582 = vmatprep.subr.bf16.mxu0 %v1045_v16  ;;  %v568_v16 = vstv %s1258_s0 }
 0x3e7   :  { %583 = vmatpush1.bf16.msra.mxu0 %v1047_v17 }
 0x3e8   :  { %584 = vmatprep.subr.bf16.mxu0 %v1051_v19 }
 0x3eb   :  { %585 = vmatpush1.bf16.msra.mxu0 %v1059_v21 }
 0x3ec   :  { %586 = vmatprep.subr.bf16.mxu0 %v1065_v22 }
 0x3ef   :  { %587 = vmatpush1.bf16.msra.mxu0 %v1068_v23 }
 0x4a5   :  { %v515_v0 = vpop.f32.mrb[8].mxu0 }
 0x4a6   :  { %v516_v2 = vadd.f32 %v515_v0, %v1128_v40  ;;  %v517_v3 = vpop.f32.mrb[9].mxu0 }
 0x4a7   :  { %v518_v4 = vadd.f32 %v517_v3, %v1130_v41  ;;  %v519_v5 = vpop.f32.mrb[10].mxu0 }
 0x4a8   :  { %v522_v6 = vpack.c.bf16 %v516_v2, %v516_v2  ;;  %v520_v7 = vpop.f32.mrb[11].mxu0 }
 0x4a9   :  { %v523_v8 = vpack.c.bf16 %v518_v4, %v518_v4 }
 0x4ab   :  { %855 = vtanh.bf16 %v523_v8 }
 0x4ac   :  { %857 = vtanh.bf16 %v522_v6 }
 0x4b6   :  { %v856_v9 = vpop.eup %855 }
 0x4b7   :  { %v858_v10 = vpop.eup %857  ;;  %558 = vmatprep.mubr.bf16.mxu1 %v856_v9 }
 0x4b8   :  { %559 = vmatmul.mubr.bf16.vlgmr.msra.gmra.mrb[8].mxu1 %v858_v10 }
 0x4b9   :  { %778 = vmatpush3.bf16.msra.mxu1 %v1030_v11 }
 0x4ba   :  { %779 = vmatprep.subr.bf16.mxu1 %v1035_v13  ;;  %v476_v13 = vmul.f32 2.0, %v471_v49 }
 0x4bc   :  { %v477_v19 = vadd.f32 %v476_v13, %v1159_v59 }
 0x4bd   :  { %780 = vmatpush3.bf16.msra.mxu1 %v1038_v14 }
 0x4be   :  { %781 = vmatprep.subr.bf16.mxu1 %v1042_v15 }
 0x4c1   :  { %782 = vmatpush3.bf16.msra.mxu1 %v1049_v18 }
 0x4c2   :  { %783 = vmatprep.subr.bf16.mxu1 %v1054_v20 }
 0x4c5   :  { %784 = vmatpush3.bf16.msra.mxu1 %v1097_v26 }
 0x4c6   :  { %785 = vmatprep.subr.bf16.mxu1 %v1100_v27 }
 0x4c9   :  { %786 = vmatpush3.bf16.msra.mxu1 %v1102_v28 }
 0x4ca   :  { %787 = vmatprep.subr.bf16.mxu1 %v1106_v29 }
 0x4cd   :  { %788 = vmatpush3.bf16.msra.mxu1 %v1108_v30 }
 0x4ce   :  { %789 = vmatprep.subr.bf16.mxu1 %v1110_v31 }
 0x4d1   :  { %790 = vmatpush3.bf16.msra.mxu1 %v1114_v32 }
 0x4d2   :  { %791 = vmatprep.subr.bf16.mxu1 %v1117_v33 }
 0x4d5   :  { %792 = vmatpush3.bf16.msra.mxu1 %v1120_v34 }
 0x58b   :  { %v771_v11 = vpop.f32.mrb[8].mxu1 }
 0x58c   :  { %v772_v12 = vpop.f32.mrb[9].mxu1 }
 0x58d   :  { %v773_v14 = vadd.f32 %v772_v12, %v771_v11  ;;  %v774_v15 = vpop.f32.mrb[10].mxu1 }
 0x58e   :  { %v775_v17 = vpop.f32.mrb[11].mxu1 }
 0x58f   :  { %v561_v18 = vadd.f32 %v773_v14, %v1156_v53 }
 0x591   :  { %v566_v20 = vmul.f32 2.0, %v561_v18  ;;  %v569_v21 = vmul.f32 %v568_v16, %v561_v18 }
 0x593   :  { %v570_v22 = vadd.f32 %v569_v21, %v1073_v24  ;;  %v567_v23 = vadd.f32 %v566_v20, %v477_v19 }
 0x595   :  { %v571_v26 = vpack.c.bf16 %v570_v22, %v570_v22 }
 0x597   :  { %605 = vmatmul.mubr.bf16.vlgmr.msra.gmra.mrb[12].mxu0 %v571_v26 }
 0x66a   :  { %v606_v27 = vpop.f32.mrb[12].mxu0 }
 0x66b   :  { %v607_v28 = vadd.f32 %v606_v27, %v1128_v40  ;;  %v608_v29 = vpop.f32.mrb[13].mxu0 }
 0x66c   :  { %v609_v30 = vadd.f32 %v608_v29, %v1130_v41  ;;  %v610_v31 = vpop.f32.mrb[14].mxu0 }
 0x66d   :  { %v613_v32 = vpack.c.bf16 %v607_v28, %v607_v28  ;;  %v611_v33 = vpop.f32.mrb[15].mxu0 }
 0x66e   :  { %v614_v34 = vpack.c.bf16 %v609_v30, %v609_v30 }
 0x670   :  { %859 = vtanh.bf16 %v614_v34 }
 0x671   :  { %861 = vtanh.bf16 %v613_v32 }
 0x67b   :  { %v860_v54 = vpop.eup %859 }
 0x67c   :  { %v862_v55 = vpop.eup %861  ;;  %649 = vmatprep.mubr.bf16.mxu1 %v860_v54 }
 0x67d   :  { %650 = vmatmul.mubr.bf16.vlgmr.msra.gmra.mrb[12].mxu1 %v862_v55 }
 0x750   :  { %v793_v56 = vpop.f32.mrb[12].mxu1 }
 0x751   :  { %v794_v57 = vpop.f32.mrb[13].mxu1 }
 0x752   :  { %v795_v40 = vadd.f32 %v794_v57, %v793_v56  ;;  %v796_v58 = vpop.f32.mrb[14].mxu1 }
 0x753   :  { %v797_v59 = vpop.f32.mrb[15].mxu1 }
 0x754   :  { %v652_v41 = vadd.f32 %v795_v40, %v1156_v53 }
 0x756   :  { %v657_v61 = vadd.f32 %v652_v41, %v567_v23 }
 0x758   :  { %v659_v62 = vmul.f32 %v658_v60, %v657_v61 }
 0x75a   :  { %v660_v63 = vadd.f32 %v659_v62, %v1073_v24 }
 0x75c   :  { %661 = vst [vmem:[#allocation8] sm:$0x3] %v660_v63 }
 0x75d   :  { %918 = shalt.err (!%p915_p6)
}
 0x75e   :  { %s919_s14 = scalar_lea.hbm %s1264_s6, 32 }
 0x75f   :  { %p920_p7 = scmp.ne.s32.totalorder %s1264_s6, %s919_s14  ;;  %p923_p8 = scmp.lt.u32.totalorder %s919_s14, %s1264_s6 }
 0x761   :  { %p925_p9 = pnand %p923_p8, %p920_p7 }
 0x763   :  { %928 = shalt.err (!%p925_p9)
}
 0x764   :  { %671 = dma.vmem_to_hbm [thread:$0]  %s669_s11, 32, %s1264_s6, [#allocation5]  }
 0x765   :  { %933 = dma.done.wait [#allocation5], 32  }
 0x766   :  { %934 = vsyncadd [#allocation5], 4294967264 }
 0x767   :  { %675 = vsyncpa [#allocation4], 1 }
 0x768   :  { %676 = vsyncpa [#allocation7], 1 }
 0x769   :  { %677 = vsyncpa [#allocation5], 1 }

</bundles_post_ra>
